<compile_context>
chip_gen: v7x
topology: tpu7x:2x2x1
jax: 0.10.0
libtpu: 0.0.40
codegen_flags: <defaults>
</compile_context>

<pallas_src>
from functools import partial

import numpy as np
import jax
import jax.numpy as jnp
from jax.experimental import pallas as pl
from jax.experimental.pallas import tpu as pltpu


# ----------------------------------------------------------------------------
# Tile selection helper
# ----------------------------------------------------------------------------
def _pick_tile(n, candidates=(512, 256, 128)):
    """Largest preferred tile that divides n, else the full extent."""
    for t in candidates:
        if n % t == 0:
            return t
    return n  # full extent: always legal for the (8,128) block constraint


# ----------------------------------------------------------------------------
# Tiled linear kernels (P1 + P3 + P9)
# ----------------------------------------------------------------------------
def _linear_kernel(x_ref, w_ref, o_ref, acc_ref):
    @pl.when(pl.program_id(2) == 0)
    def _init():
        acc_ref[...] = jnp.zeros_like(acc_ref)

    acc_ref[...] += jnp.dot(x_ref[...], w_ref[...],
                            preferred_element_type=jnp.float32)

    @pl.when(pl.program_id(2) == pl.num_programs(2) - 1)
    def _store():
        o_ref[...] = acc_ref[...].astype(o_ref.dtype)


def _linear_bias_kernel(x_ref, w_ref, b_ref, o_ref, acc_ref):
    @pl.when(pl.program_id(2) == 0)
    def _init():
        acc_ref[...] = jnp.zeros_like(acc_ref)

    acc_ref[...] += jnp.dot(x_ref[...], w_ref[...],
                            preferred_element_type=jnp.float32)

    @pl.when(pl.program_id(2) == pl.num_programs(2) - 1)
    def _store():
        o_ref[...] = (acc_ref[...] + b_ref[...].astype(jnp.float32)
                      ).astype(o_ref.dtype)


def pallas_linear(x2d, w_t, bias2d=None):
    """y = x2d @ w_t (+ bias).  x2d: (M, K), w_t: (K, Nout), bias2d: (1, Nout)."""
    M, K = x2d.shape
    K2, Nout = w_t.shape
    assert K == K2
    tm = _pick_tile(M)
    tn = _pick_tile(Nout)
    tk = _pick_tile(K)
    grid = (M // tm, Nout // tn, K // tk)
    x_spec = pl.BlockSpec((tm, tk), lambda i, j, k: (i, k))
    w_spec = pl.BlockSpec((tk, tn), lambda i, j, k: (k, j))
    o_spec = pl.BlockSpec((tm, tn), lambda i, j, k: (i, j))
    params = pltpu.CompilerParams(
        dimension_semantics=("parallel", "parallel", "arbitrary"))
    scratch = [pltpu.VMEM((tm, tn), jnp.float32)]

    if bias2d is None:
        return pl.pallas_call(
            _linear_kernel,
            out_shape=jax.ShapeDtypeStruct((M, Nout), x2d.dtype),
            grid=grid,
            in_specs=[x_spec, w_spec],
            out_specs=o_spec,
            scratch_shapes=scratch,
            compiler_params=params,
        )(x2d, w_t)

    b_spec = pl.BlockSpec((1, tn), lambda i, j, k: (0, j))
    return pl.pallas_call(
        _linear_bias_kernel,
        out_shape=jax.ShapeDtypeStruct((M, Nout), x2d.dtype),
        grid=grid,
        in_specs=[x_spec, w_spec, b_spec],
        out_specs=o_spec,
        scratch_shapes=scratch,
        compiler_params=params,
    )(x2d, w_t, bias2d)


# ----------------------------------------------------------------------------
# Flash-style cross attention: packed pred queries over packed ctx keys/values.
# q: (B, Sq, C), kv: (B, Sk, 2C) with channels [0:C]=K, [C:2C]=V.
# ----------------------------------------------------------------------------
def _cross_attn_kernel(q_ref, kv_ref, o_ref, m_ref, l_ref, acc_ref, *,
                       num_heads, head_dim, scale):
    H, D = num_heads, head_dim
    C = H * D
    kv_step = pl.program_id(2)

    @pl.when(kv_step == 0)
    def _init():
        m_ref[...] = jnp.full_like(m_ref, -1e30)   # finite sentinel, no NaN
        l_ref[...] = jnp.zeros_like(l_ref)
        acc_ref[...] = jnp.zeros_like(acc_ref)

    q = q_ref[...]                                  # (tq, C), lane-dense
    qs = (q * scale).astype(q.dtype)                # scale q once: O(tq*C)
    kv = kv_ref[...]                                # (tkv, 2C), lane-dense

    for h in range(H):                              # static unrolled head loop
        q_h = qs[:, h * D:(h + 1) * D]              # (tq, D)
        k_h = kv[:, h * D:(h + 1) * D]              # (tkv, D)
        v_h = kv[:, C + h * D:C + (h + 1) * D]      # (tkv, D)

        s = jax.lax.dot_general(                    # (tq, tkv) f32 scores
            q_h, k_h, (((1,), (1,)), ((), ())),
            preferred_element_type=jnp.float32)

        m_prev = m_ref[h]                           # (tq, 1)
        l_prev = l_ref[h]
        a_prev = acc_ref[h]                         # (tq, D)

        m_new = jnp.maximum(m_prev, jnp.max(s, axis=-1, keepdims=True))
        alpha = jnp.exp(m_prev - m_new)
        p = jnp.exp(s - m_new)

        l_ref[h] = alpha * l_prev + jnp.sum(p, axis=-1, keepdims=True)
        acc_ref[h] = alpha * a_prev + jnp.dot(
            p.astype(kv.dtype), v_h, preferred_element_type=jnp.float32)
        m_ref[h] = m_new

    @pl.when(kv_step == pl.num_programs(2) - 1)
    def _finalize():
        outs = []
        for h in range(H):
            inv = pl.reciprocal(l_ref[h], approx=True)   # EUP slot
            outs.append(acc_ref[h] * inv)
        # single lane-dense (tq, C) store
        o_ref[...] = jnp.concatenate(outs, axis=-1).astype(o_ref.dtype)


def pallas_cross_attention(q, kv, *, num_heads, scale):
    B, Sq, C = q.shape
    B2, Sk, C2 = kv.shape
    assert B2 == B and C2 == 2 * C
    D = C // num_heads
    tq = _pick_tile(Sq)
    tkv = _pick_tile(Sk)
    grid = (B, Sq // tq, Sk // tkv)   # reduction (kv) axis last

    return pl.pallas_call(
        partial(_cross_attn_kernel, num_heads=num_heads, head_dim=D,
                scale=scale),
        out_shape=jax.ShapeDtypeStruct((B, Sq, C), q.dtype),
        grid=grid,
        in_specs=[
            pl.BlockSpec((None, tq, C), lambda b, i, j: (b, i, 0)),
            pl.BlockSpec((None, tkv, 2 * C), lambda b, i, j: (b, j, 0)),
        ],
        out_specs=pl.BlockSpec((None, tq, C), lambda b, i, j: (b, i, 0)),
        scratch_shapes=[
            pltpu.VMEM((num_heads, tq, 1), jnp.float32),   # running max
            pltpu.VMEM((num_heads, tq, 1), jnp.float32),   # running denom
            pltpu.VMEM((num_heads, tq, D), jnp.float32),   # running numerator
        ],
        compiler_params=pltpu.CompilerParams(
            dimension_semantics=("parallel", "parallel", "arbitrary")),
    )(q, kv)


# ----------------------------------------------------------------------------
# CrossAttention module (forward pass)
# ----------------------------------------------------------------------------
class CrossAttentionPallas:
    def __init__(self, dim, num_heads, noise=True, key=None):
        self.dim = dim
        self.num_heads = num_heads
        self.head_dim = dim // num_heads
        self.scale = self.head_dim ** (-0.5)
        self.noise = noise
        self.noise_strength = jnp.zeros([], jnp.float32)   # torch.zeros([])

        if key is None:
            key = jax.random.PRNGKey(0)
        k1, k2, k3, k4 = jax.random.split(key, 4)
        bound = 1.0 / (dim ** 0.5)   # nn.Linear default init
        # PyTorch convention: weight shape (out_features, in_features)
        self.Wq = jax.random.uniform(k1, (dim, dim), jnp.float32, -bound, bound)
        self.Wkv = jax.random.uniform(k2, (2 * dim, dim), jnp.float32, -bound, bound)
        self.Wproj = jax.random.uniform(k3, (dim, dim), jnp.float32, -bound, bound)
        self.bproj = jax.random.uniform(k4, (dim,), jnp.float32, -bound, bound)
        # Pre-transposed copies (done once, not per call)
        self.Wq_T = jnp.asarray(self.Wq.T)          # (dim, dim)
        self.Wkv_T = jnp.asarray(self.Wkv.T)        # (dim, 2*dim)
        self.Wproj_T = jnp.asarray(self.Wproj.T)    # (dim, dim)
        self.bproj2d = self.bproj.reshape(1, dim)

    def __call__(self, x_pred, x_ctx, ctx_mask, noise_key=None):
        assert ctx_mask is not None
        ctx_mask = np.asarray(ctx_mask, dtype=bool)
        pred_mask = ~ctx_mask
        B, T = ctx_mask.shape
        Bp, N, C = x_pred.shape
        H = self.num_heads

        kc = ctx_mask.sum(axis=1)
        kp = pred_mask.sum(axis=1)
        # TODO(synk): ragged #ctx/#pred frames per batch element would need the
        # general (undefined) from_ctx/to_ctx helpers; we assume uniform counts.
        assert (kc == kc[0]).all() and (kp == kp[0]).all()
        Kc, Kp = int(kc[0]), int(kp[0])
        assert Kc >= 1, "at least one context frame per batch element required"
        assert Bp == B * Kp and x_ctx.shape == (B * Kc, N, C)

        if self.noise:
            if noise_key is None:
                noise_key = jax.random.PRNGKey(0)
            eps = jax.random.normal(noise_key, (Bp, N, 1), x_pred.dtype)
            x_pred = x_pred + eps * self.noise_strength

        # ---- q / kv projections (tiled Pallas matmuls) ----
        q_lin = pallas_linear(x_pred.reshape(-1, C), self.Wq_T)      # (B*Kp*N, C)
        kv_lin = pallas_linear(x_ctx.reshape(-1, C), self.Wkv_T)     # (B*Kc*N, 2C)

        # Packed layouts: no from_ctx scatter, no transposes, no mask needed.
        q = q_lin.reshape(B, Kp * N, C)
        kv = kv_lin.reshape(B, Kc * N, 2 * C)

        # ---- flash-style attention (pred queries over ctx keys/values) ----
        attn_out = pallas_cross_attention(q, kv, num_heads=H, scale=self.scale)

        # ---- output projection ----
        out = pallas_linear(attn_out.reshape(-1, C), self.Wproj_T, self.bproj2d)
        return out.reshape(B * Kp, N, C)


# ----------------------------------------------------------------------------
# Plain-numpy reference of the ORIGINAL (scattered + masked) formulation,
# used to check the packed-attention equivalence.
# ----------------------------------------------------------------------------
def _reference_forward(module, x_pred, x_ctx, ctx_mask):
    ctx_mask = np.asarray(ctx_mask, bool)
    pred_mask = ~ctx_mask
    B, T = ctx_mask.shape
    xp = np.asarray(x_pred, np.float64)
    xc = np.asarray(x_ctx, np.float64)
    _, N, C = xp.shape
    H = module.num_heads
    D = C // H
    Wq = np.asarray(module.Wq, np.float64)
    Wkv = np.asarray(module.Wkv, np.float64)
    Wproj = np.asarray(module.Wproj, np.float64)
    bproj = np.asarray(module.bproj, np.float64)

    def scatter(x_packed, mask):
        K = int(mask[0].sum())
        x_packed = x_packed.reshape(B, K, N, -1)
        out = np.zeros((B, T, N, x_packed.shape[-1]), np.float64)
        for b in range(B):
            out[b, np.nonzero(mask[b])[0]] = x_packed[b]
        return out

    q = scatter(xp @ Wq.T, pred_mask).reshape(B, T * N, H, D).transpose(0, 2, 1, 3)
    kv = scatter(xc @ Wkv.T, ctx_mask).reshape(B, T * N, 2, H, D).transpose(2, 0, 3, 1, 4)
    k, v = kv[0], kv[1]

    attn = np.einsum('bhqd,bhkd->bhqk', q, k) * module.scale
    predf = np.repeat(pred_mask, N, axis=1)                       # (B, T*N)
    pair = (predf[:, None, :, None] & predf[:, None, None, :])    # (B,1,S,S)
    attn = np.where(pair, -1e30, attn)
    attn = attn - attn.max(-1, keepdims=True)
    e = np.exp(attn)
    attn = e / e.sum(-1, keepdims=True)

    x = np.einsum('bhqk,bhkd->bhqd', attn, v).transpose(0, 2, 1, 3)
    x = x.reshape(B, T, N, C)
    rows = []
    for b in range(B):
        rows.append(x[b, np.nonzero(pred_mask[b])[0]])
    x = np.stack(rows, 0).reshape(-1, N, C)
    return x @ Wproj.T + bproj


# ----------------------------------------------------------------------------
if __name__ == "__main__":
    B, T, N = 2, 4, 8           # batch, frames, tokens per frame
    dim, num_heads = 32, 4
    ctx_mask = np.array(
        [[True, True, False, False],
         [True, False, True, False]]
    )
    Kc = int(ctx_mask[0].sum())
    Kp = T - Kc

    key = jax.random.PRNGKey(0)
    kx1, kx2, kparam, knoise = jax.random.split(key, 4)
    x_pred = jax.random.normal(kx1, (B * Kp, N, dim), jnp.float32)
    x_ctx = jax.random.normal(kx2, (B * Kc, N, dim), jnp.float32)

    module = CrossAttentionPallas(dim, num_heads, noise=True, key=kparam)
    out = module(x_pred, x_ctx, ctx_mask, noise_key=knoise)
    out = jax.block_until_ready(out)

    assert out.shape == (B * Kp, N, dim), out.shape
    out_np = np.asarray(out)
    assert np.isfinite(out_np).all()

    ref = _reference_forward(module, x_pred, x_ctx, ctx_mask)
    assert np.allclose(out_np, ref, rtol=5e-2, atol=5e-2), (
        float(np.abs(out_np - ref).max()))

    print("KERNEL_OK")
</pallas_src>

<mosaic_0001>
module attributes {stable_mosaic.version = 11 : i64} {
  func.func @_linear_kernel(%arg0: i32, %arg1: i32, %arg2: i32, %arg3: memref<32x32xf32, #tpu.memory_space<vmem>>, %arg4: memref<32x32xf32, #tpu.memory_space<vmem>>, %arg5: memref<32x32xf32, #tpu.memory_space<vmem>>, %arg6: memref<32x32xf32, #tpu.memory_space<vmem>>) attributes {dimension_semantics = [#tpu.dimension_semantics<parallel>, #tpu.dimension_semantics<parallel>, #tpu.dimension_semantics<arbitrary>], iteration_bounds = array<i64: 1, 1, 1>, scalar_prefetch = 0 : i64, scratch_operands = 1 : i64, tpu.core_type = #tpu.core_type<tc>, window_params = [{transform_indices = @transform_0, window_bounds = array<i64: 32, 32>}, {transform_indices = @transform_1, window_bounds = array<i64: 32, 32>}, {transform_indices = @transform_2, window_bounds = array<i64: 32, 32>}]} {
    %c0_i32 = arith.constant 0 : i32
    %0 = arith.cmpi eq, %arg2, %c0_i32 : i32
    %1 = arith.extui %0 : i1 to i32
    %c0_i32_0 = arith.constant 0 : i32
    %2 = arith.cmpi ne, %1, %c0_i32_0 : i32
    scf.if %2 {
      %cst_10 = arith.constant 0.000000e+00 : f32
      %12 = vector.broadcast %cst_10 : f32 to vector<32x32xf32>
      %c0_11 = arith.constant 0 : index
      %c0_12 = arith.constant 0 : index
      %13 = vector.load %arg6[%c0_11, %c0_12] : memref<32x32xf32, #tpu.memory_space<vmem>>, vector<32x32xf32>
      tpu.vector_store %arg6[%c0_11, %c0_12], %12 {strides = array<i32>} : memref<32x32xf32, #tpu.memory_space<vmem>>, vector<32x32xf32>,
    } else {
    }
    %c0 = arith.constant 0 : index
    %c0_1 = arith.constant 0 : index
    %3 = vector.load %arg6[%c0, %c0_1] : memref<32x32xf32, #tpu.memory_space<vmem>>, vector<32x32xf32>
    %c0_2 = arith.constant 0 : index
    %c0_3 = arith.constant 0 : index
    %4 = vector.load %arg3[%c0_2, %c0_3] : memref<32x32xf32, #tpu.memory_space<vmem>>, vector<32x32xf32>
    %c0_4 = arith.constant 0 : index
    %c0_5 = arith.constant 0 : index
    %5 = vector.load %arg4[%c0_4, %c0_5] : memref<32x32xf32, #tpu.memory_space<vmem>>, vector<32x32xf32>
    %cst = arith.constant dense<0.000000e+00> : vector<32x32xf32>
    %6 = tpu.matmul %4, %5, %cst {dimension_numbers = #tpu.dot_dimension_numbers<[1], [0], [0], [1], [0, 0, 1, 1], [], []>} : vector<32x32xf32>, vector<32x32xf32>, vector<32x32xf32> -> vector<32x32xf32>
    %7 = arith.addf %3, %6 : vector<32x32xf32>
    %c0_6 = arith.constant 0 : index
    %c0_7 = arith.constant 0 : index
    %8 = vector.load %arg6[%c0_6, %c0_7] : memref<32x32xf32, #tpu.memory_space<vmem>>, vector<32x32xf32>
    tpu.vector_store %arg6[%c0_6, %c0_7], %7 {strides = array<i32>} : memref<32x32xf32, #tpu.memory_space<vmem>>, vector<32x32xf32>,
    %c0_i32_8 = arith.constant 0 : i32
    %9 = arith.cmpi eq, %arg2, %c0_i32_8 : i32
    %10 = arith.extui %9 : i1 to i32
    %c0_i32_9 = arith.constant 0 : i32
    %11 = arith.cmpi ne, %10, %c0_i32_9 : i32
    scf.if %11 {
      %c0_10 = arith.constant 0 : index
      %c0_11 = arith.constant 0 : index
      %12 = vector.load %arg6[%c0_10, %c0_11] : memref<32x32xf32, #tpu.memory_space<vmem>>, vector<32x32xf32>
      %c0_12 = arith.constant 0 : index
      %c0_13 = arith.constant 0 : index
      %13 = vector.load %arg5[%c0_12, %c0_13] : memref<32x32xf32, #tpu.memory_space<vmem>>, vector<32x32xf32>
      tpu.vector_store %arg5[%c0_12, %c0_13], %12 {strides = array<i32>} : memref<32x32xf32, #tpu.memory_space<vmem>>, vector<32x32xf32>,
    } else {
    }
    return
  }
  func.func @transform_0(%arg0: i32, %arg1: i32, %arg2: i32) -> (i32, i32) {
    %c0_i32 = arith.constant 0 : i32
    return %arg0, %arg2 : i32, i32
  }
  func.func @transform_1(%arg0: i32, %arg1: i32, %arg2: i32) -> (i32, i32) {
    %c0_i32 = arith.constant 0 : i32
    return %arg2, %arg1 : i32, i32
  }
  func.func @transform_2(%arg0: i32, %arg1: i32, %arg2: i32) -> (i32, i32) {
    %c0_i32 = arith.constant 0 : i32
    return %arg0, %arg1 : i32, i32
  }
}

</mosaic_0001>

<bundles_post_ra>
// kernel: tpu_custom_call.1
= control target key start
LH: loop header
LB: loop body
LE: loop exit
PB: predicated region body
PF: predicated region fallthrough
CT: control target
= control target key end

     0   :  { %7 = vsyncpa [#allocation4], 0  ;;  %s394_s0 = inlined_call_operand.hbm [shape: f32[32,32], index: 0, kind: input, shape index: {}]   ;;  %s395_s1 = inlined_call_operand.hbm [shape: f32[32,32], index: 1, kind: input, shape index: {}]   ;;  %s396_s2 = inlined_call_operand.hbm [shape: f32[32,32], index: 2, kind: output, shape index: {}]  }
   0x1   :  { %8 = vsyncpa [#allocation7], 0 }
   0x2   :  { %9 = vsyncpa [#allocation5], 0  ;;  %s312_s9 = smov [#allocation3]   ;;  %s240_s13 = scalar_lea.hbm %s394_s0, 512 }
   0x3   :  { %s15_s10 = sshll.u32 %s312_s9, 4  ;;  %p241_p0 = scmp.ne.s32.totalorder %s394_s0, %s240_s13  ;;  %s16_s10 = int_to_ptr.vmem [resolvable:$true] %s15_s10 }
   0x4   :  { %p244_p1 = scmp.lt.u32.totalorder %s240_s13, %s394_s0 }
   0x6   :  { %p246_p2 = pnand %p244_p1, %p241_p0 }
   0x8   :  { %249 = shalt.err (!%p246_p2)
}
   0x9   :  { %s250_s18 = scalar_lea.vmem %s16_s10, 512  ;;  %p255_p4 = scmp.lt.s32.totalorder %s16_s10, %s16_s10 }
   0xa   :  { %p251_p3 = scmp.ne.s32.totalorder %s16_s10, %s250_s18  ;;  %p256_p5 = scmp.lt.s32.totalorder %s250_s18, %s250_s18 }
   0xc   :  { %p257_p6 = por %p256_p5, %p255_p4 }
   0xe   :  { %p258_p7 = pnand %p257_p6, %p251_p3 }
  0x10   :  { %261 = shalt.err (!%p258_p7)
}
  0x11   :  { %s313_s19 = smov 128   ;;  %s314_s20 = smov 8  }
  0x12   :  { %21 = dma.hbm_to_vmem [thread:$0]  %s394_s0, 512, %s16_s10, [#allocation4], %s313_s19, %s313_s19, %s314_s20  }
  0x13   :  { %s315_s23 = smov [#allocation6]   ;;  %s262_s27 = scalar_lea.hbm %s395_s1, 512 }
  0x14   :  { %s27_s24 = sshll.u32 %s315_s23, 4  ;;  %p263_p8 = scmp.ne.s32.totalorder %s395_s1, %s262_s27  ;;  %s28_s24 = int_to_ptr.vmem [resolvable:$true] %s27_s24 }
  0x15   :  { %p266_p9 = scmp.lt.u32.totalorder %s262_s27, %s395_s1 }
  0x17   :  { %p268_p10 = pnand %p266_p9, %p263_p8 }
  0x19   :  { %271 = shalt.err (!%p268_p10)
}
  0x1a   :  { %s272_s4 = scalar_lea.vmem %s28_s24, 512  ;;  %p277_p12 = scmp.lt.s32.totalorder %s28_s24, %s28_s24 }
  0x1b   :  { %p273_p11 = scmp.ne.s32.totalorder %s28_s24, %s272_s4  ;;  %p278_p13 = scmp.lt.s32.totalorder %s272_s4, %s272_s4 }
  0x1d   :  { %p279_p0 = por %p278_p13, %p277_p12 }
  0x1f   :  { %p280_p1 = pnand %p279_p0, %p273_p11 }
  0x21   :  { %283 = shalt.err (!%p280_p1)
}
  0x22   :  { %33 = dma.hbm_to_vmem [thread:$0]  %s395_s1, 512, %s28_s24, [#allocation7], %s313_s19, %s313_s19, %s314_s20  }
  0x23   :  { %306 = dma.done.wait [#allocation4], 512  }
  0x24   :  { %307 = vsyncadd [#allocation4], 4294966784 }
  0x25   :  { %308 = dma.done.wait [#allocation7], 512  }
  0x26   :  { %309 = vsyncadd [#allocation7], 4294966784  ;;  %vm44_vm0 = vcmask 261120   ;;  %v316_v0 = vmov 0.0   ;;  %v57_v1 = vld [vmem:[#allocation6] sm:$0xff]  ;;  %v58_v2 = vld [vmem:[#allocation6 + $0x8] sm:$0xff] }
  0x27   :  { %46 = vst.msk [vmem:[#allocation2 + $0x8] sm:$0xff] %vm44_vm0, %v316_v0  ;;  %45 = vst.msk [vmem:[#allocation2] sm:$0xff] %vm44_vm0, %v316_v0  ;;  %v59_v3 = vld [vmem:[#allocation6 + $0x10] sm:$0xff]  ;;  %v222_v4 = vpack.c.bf16 %v58_v2, %v57_v1  ;;  %v60_v5 = vld [vmem:[#allocation6 + $0x18] sm:$0xff]  ;;  %s317_s1 = smov [#allocation8]  }
  0x28   :  { %47 = vst.msk [vmem:[#allocation2 + $0x10] sm:$0xff] %vm44_vm0, %v316_v0  ;;  %48 = vst.msk [vmem:[#allocation2 + $0x18] sm:$0xff] %vm44_vm0, %v316_v0  ;;  %v53_v6 = vld [vmem:[#allocation3] sm:$0xff]  ;;  %v55_v7 = vld [vmem:[#allocation3 + $0x10] sm:$0xff]  ;;  %v226_v8 = vpack.c.bf16 %v60_v5, %v59_v3  ;;  %s183_s6 = sshll.u32 %s317_s1, 4  ;;  %s184_s6 = int_to_ptr.vmem [resolvable:$true] %s183_s6 }
  0x29   :  { %216 = vmatprep.mubr.msk.f32.mxu0 %vm44_vm0, %v53_v6  ;;  %219 = vmatprep.mubr.msk.f32.mxu1 %vm44_vm0, %v55_v7  ;;  %v54_v9 = vld [vmem:[#allocation3 + $0x8] sm:$0xff]  ;;  %v56_v10 = vld [vmem:[#allocation3 + $0x18] sm:$0xff]  ;;  %s284_s7 = scalar_lea.vmem %s184_s6, 512  ;;  %p289_p3 = scmp.lt.s32.totalorder %s184_s6, %s184_s6 }
  0x2a   :  { %223 = vmatprep.subr.bf16.mxu0 %v222_v4  ;;  %230 = vmatprep.subr.bf16.mxu1 %v222_v4  ;;  %p285_p2 = scmp.ne.s32.totalorder %s184_s6, %s284_s7  ;;  %p290_p4 = scmp.lt.s32.totalorder %s284_s7, %s284_s7 }
  0x2b   :  { %225 = vmatpush3.bf16.msra.mxu0 %v222_v4  ;;  %232 = vmatpush3.bf16.msra.mxu1 %v222_v4 }
  0x2c   :  { %227 = vmatprep.subr.bf16.mxu0 %v226_v8  ;;  %231 = vmatprep.subr.bf16.mxu1 %v226_v8  ;;  %p291_p5 = por %p290_p4, %p289_p3 }
  0x2e   :  { %v50_v11 = vld [vmem:[#allocation2 + $0x8] sm:$0xff]  ;;  %v49_v13 = vld [vmem:[#allocation2] sm:$0xff]  ;;  %p292_p6 = pnand %p291_p5, %p285_p2 }
  0x2f   :  { %229 = vmatpush3.bf16.msra.mxu0 %v226_v8  ;;  %233 = vmatpush3.bf16.msra.mxu1 %v226_v8  ;;  %v52_v12 = vld [vmem:[#allocation2 + $0x18] sm:$0xff]  ;;  %v51_v14 = vld [vmem:[#allocation2 + $0x10] sm:$0xff] }
  0x32   :  { %217 = vmatmul.mubr.msk.f32.vlgmr.msra.gmra.mrb[0].mxu0 %vm44_vm0, %v54_v9  ;;  %220 = vmatmul.mubr.msk.f32.vlgmr.msra.gmra.mrb[0].mxu1 %vm44_vm0, %v56_v10 }
 0x105   :  { %v218_v15 = vpop.f32.mrb[0].mxu0  ;;  %v221_v16 = vpop.f32.mrb[0].mxu1 }
 0x106   :  { %v160_v17 = vadd.f32 %v218_v15, %v50_v11  ;;  %v162_v18 = vadd.f32 %v221_v16, %v52_v12  ;;  %v140_v19 = vpop.f32.mrb[1].mxu0  ;;  %v150_v20 = vpop.f32.mrb[1].mxu1 }
 0x107   :  { %v159_v21 = vadd.f32 %v140_v19, %v49_v13  ;;  %v161_v22 = vadd.f32 %v150_v20, %v51_v14 }
 0x108   :  { %164 = vst.msk [vmem:[#allocation2 + $0x8] sm:$0xff] %vm44_vm0, %v160_v17  ;;  %166 = vst.msk [vmem:[#allocation2 + $0x18] sm:$0xff] %vm44_vm0, %v162_v18 }
 0x109   :  { %163 = vst.msk [vmem:[#allocation2] sm:$0xff] %vm44_vm0, %v159_v21  ;;  %165 = vst.msk [vmem:[#allocation2 + $0x10] sm:$0xff] %vm44_vm0, %v161_v22 }
 0x10f   :  { %v171_v23 = vld [vmem:[#allocation2 + $0x8] sm:$0xff]  ;;  %v173_v24 = vld [vmem:[#allocation2 + $0x18] sm:$0xff] }
 0x110   :  { %v170_v25 = vld [vmem:[#allocation2] sm:$0xff]  ;;  %v172_v26 = vld [vmem:[#allocation2 + $0x10] sm:$0xff]  ;;  %175 = vst.msk [vmem:[#allocation8 + $0x8] sm:$0xff] %vm44_vm0, %v171_v23  ;;  %177 = vst.msk [vmem:[#allocation8 + $0x18] sm:$0xff] %vm44_vm0, %v173_v24 }
 0x111   :  { %174 = vst.msk [vmem:[#allocation8] sm:$0xff] %vm44_vm0, %v170_v25  ;;  %176 = vst.msk [vmem:[#allocation8 + $0x10] sm:$0xff] %vm44_vm0, %v172_v26 }
 0x112   :  { %295 = shalt.err (!%p292_p6)
}
 0x113   :  { %s296_s10 = scalar_lea.hbm %s396_s2, 512 }
 0x114   :  { %p297_p7 = scmp.ne.s32.totalorder %s396_s2, %s296_s10  ;;  %p300_p8 = scmp.lt.u32.totalorder %s296_s10, %s396_s2 }
 0x116   :  { %p302_p9 = pnand %p300_p8, %p297_p7 }
 0x118   :  { %305 = shalt.err (!%p302_p9)
}
 0x119   :  { %189 = dma.vmem_to_hbm [thread:$0]  %s184_s6, 512, %s396_s2, [#allocation5], %s313_s19, %s313_s19, %s314_s20  }
 0x11a   :  { %310 = dma.done.wait [#allocation5], 512  }
 0x11b   :  { %311 = vsyncadd [#allocation5], 4294966784 }
 0x11c   :  { %193 = vsyncpa [#allocation4], 1 }
 0x11d   :  { %194 = vsyncpa [#allocation7], 1 }
 0x11e   :  { %195 = vsyncpa [#allocation5], 1 }

</bundles_post_ra>
